<compile_context>
chip_gen: v6e
topology: v6e:2x2x1
jax: 0.10.0
libtpu: 0.0.40
codegen_flags: <defaults>
</compile_context>

<pallas_src>
import functools
import math

import jax
import jax.numpy as jnp
from jax.experimental import pallas as pl
from jax.experimental.pallas import tpu as pltpu


def _layernorm(x, gamma, beta, eps=1e-5):
    # Biased variance (matches PyTorch nn.LayerNorm), single pass in f32.
    mu = jnp.mean(x, axis=-1, keepdims=True)
    ms = jnp.mean(x * x, axis=-1, keepdims=True)
    var = ms - mu * mu
    return (x - mu) * jax.lax.rsqrt(var + eps) * gamma + beta


def _fused_encoder_kernel(
    q_ref, kv_ref,
    wqT_ref, wkvT_ref, woT_ref, w1T_ref, w2T_ref,
    vecD_ref, vecH_ref,
    out_ref,
    x_ref,                      # VMEM scratch: f32 activation carried across layers
    *, scale, B, Lq, Lk, D, H,
):
    layer = pl.program_id(0)
    bf16 = jnp.bfloat16

    @pl.when(layer == 0)
    def _():
        x_ref[...] = q_ref[...].astype(jnp.float32)

    x = x_ref[...]                                        # (B, Lq, D) f32 carry
    xf = x.reshape(B * Lq, D)
    kv_bf = kv_ref[...].reshape(B * Lk, D).astype(bf16)   # cast once per layer

    # packed bias / LayerNorm vectors ((1, D) / (1, H) rows -> broadcast)
    bq  = vecD_ref[0:1, :]
    bo  = vecD_ref[1:2, :]
    g1  = vecD_ref[2:3, :]
    be1 = vecD_ref[3:4, :]
    b2  = vecD_ref[4:5, :]
    g2  = vecD_ref[5:6, :]
    be2 = vecD_ref[6:7, :]
    bkv = vecH_ref[0:1, :]
    b1  = vecH_ref[1:2, :]

    # ---- projections (bf16 MXU operands, f32 accumulate) ----
    qp = jnp.dot(xf.astype(bf16), wqT_ref[...],
                 preferred_element_type=jnp.float32) + bq             # (B*Lq, D)
    kvp = jnp.dot(kv_bf, wkvT_ref[...],
                  preferred_element_type=jnp.float32) + bkv           # (B*Lk, 2D)

    qp3 = qp.reshape(B, Lq, D)
    kp = kvp[:, :D].reshape(B, Lk, D)
    vp = kvp[:, D:].reshape(B, Lk, D)

    # ---- single-head scaled dot-product attention ----
    s = jnp.einsum("bqd,bkd->bqk", qp3.astype(bf16), kp.astype(bf16),
                   preferred_element_type=jnp.float32) * scale        # (B,Lq,Lk)
    s = s - jnp.max(s, axis=-1, keepdims=True)
    p = jnp.exp(s)
    p = p * pl.reciprocal(jnp.sum(p, axis=-1, keepdims=True), approx=True)

    attn = jnp.einsum("bqk,bkd->bqd", p.astype(bf16), vp.astype(bf16),
                      preferred_element_type=jnp.float32)             # (B,Lq,D)
    attn = attn.reshape(B * Lq, D)
    attn = jnp.dot(attn.astype(bf16), woT_ref[...],
                   preferred_element_type=jnp.float32) + bo           # (B*Lq, D)

    # ---- residual + LayerNorm 1 ----
    x1 = _layernorm(xf + attn, g1, be1)

    # ---- FFN: Linear(D, 2D) -> ReLU -> Linear(2D, D) ----
    h = jnp.dot(x1.astype(bf16), w1T_ref[...],
                preferred_element_type=jnp.float32) + b1              # (B*Lq, H)
    h = jnp.maximum(h, 0.0)
    ffn = jnp.dot(h.astype(bf16), w2T_ref[...],
                  preferred_element_type=jnp.float32) + b2            # (B*Lq, D)

    # ---- residual + LayerNorm 2 ----
    x2 = _layernorm(x1 + ffn, g2, be2)
    x_ref[...] = x2.reshape(B, Lq, D)

    @pl.when(layer == pl.num_programs(0) - 1)
    def _():
        out_ref[...] = x2.reshape(B, Lq, D).astype(out_ref.dtype)


def interaction_encoder(ego_embedding, other_embeddings, params):
    """Full InteractionEncoder forward in a single pallas_call.

    ego_embedding: (B, Lq, D); other_embeddings: (B, Lk, D).
    params: dict of per-layer weights stacked along a leading layer axis.
    """
    B, Lq, D = ego_embedding.shape
    _, Lk, _ = other_embeddings.shape
    L = params["wqT"].shape[0]
    H = params["w1T"].shape[2]
    scale = 1.0 / math.sqrt(D)        # n_heads = 1 -> head_dim = D

    kernel = functools.partial(_fused_encoder_kernel, scale=scale,
                               B=B, Lq=Lq, Lk=Lk, D=D, H=H)

    def wspec(arr):
        # per-layer weight block: squeeze the leading layer axis
        nd = arr.ndim - 1
        return pl.BlockSpec((None,) + arr.shape[1:],
                            lambda l, _nd=nd: (l,) + (0,) * _nd)

    in_specs = [
        pl.BlockSpec((B, Lq, D), lambda l: (0, 0, 0)),   # q, resident across layers
        pl.BlockSpec((B, Lk, D), lambda l: (0, 0, 0)),   # kv, resident across layers
        wspec(params["wqT"]),
        wspec(params["wkvT"]),
        wspec(params["woT"]),
        wspec(params["w1T"]),
        wspec(params["w2T"]),
        wspec(params["vecD"]),
        wspec(params["vecH"]),
    ]

    return pl.pallas_call(
        kernel,
        out_shape=jax.ShapeDtypeStruct((B, Lq, D), ego_embedding.dtype),
        grid_spec=pltpu.PrefetchScalarGridSpec(
            num_scalar_prefetch=0,
            grid=(L,),
            in_specs=in_specs,
            out_specs=pl.BlockSpec((B, Lq, D), lambda l: (0, 0, 0)),
            scratch_shapes=[pltpu.VMEM((B, Lq, D), jnp.float32)],
        ),
        compiler_params=pltpu.CompilerParams(
            dimension_semantics=("arbitrary",),   # sequential layer loop
        ),
    )(ego_embedding, other_embeddings,
      params["wqT"], params["wkvT"], params["woT"],
      params["w1T"], params["w2T"], params["vecD"], params["vecH"])


def init_params(key, n_blocks, hidden_dim):
    """Stacked per-layer parameters (weights pre-transposed, stored in bf16)."""
    D = hidden_dim
    H = 2 * D
    std = 0.02
    wqT, wkvT, woT, w1T, w2T, vecD, vecH = [], [], [], [], [], [], []
    for k in jax.random.split(key, n_blocks):
        ks = jax.random.split(k, 8)
        wq = jax.random.normal(ks[0], (D, D), jnp.float32) * std
        wk = jax.random.normal(ks[1], (D, D), jnp.float32) * std
        wv = jax.random.normal(ks[2], (D, D), jnp.float32) * std
        wo = jax.random.normal(ks[3], (D, D), jnp.float32) * std
        w1 = jax.random.normal(ks[4], (H, D), jnp.float32) * std
        w2 = jax.random.normal(ks[5], (D, H), jnp.float32) * std
        bq = jax.random.normal(ks[6], (D,), jnp.float32) * std
        bo = jax.random.normal(ks[7], (D,), jnp.float32) * std
        bk = jnp.zeros((D,), jnp.float32)
        bv = jnp.zeros((D,), jnp.float32)
        b1 = jnp.zeros((H,), jnp.float32)
        b2 = jnp.zeros((D,), jnp.float32)
        g1 = jnp.ones((D,), jnp.float32)
        be1 = jnp.zeros((D,), jnp.float32)
        g2 = jnp.ones((D,), jnp.float32)
        be2 = jnp.zeros((D,), jnp.float32)

        wqT.append(wq.T.astype(jnp.bfloat16))
        wkvT.append(jnp.concatenate([wk.T, wv.T], axis=1).astype(jnp.bfloat16))
        woT.append(wo.T.astype(jnp.bfloat16))
        w1T.append(w1.T.astype(jnp.bfloat16))
        w2T.append(w2.T.astype(jnp.bfloat16))
        # (8, D) slab: bq, bo, g1, be1, b2, g2, be2, pad
        vecD.append(jnp.stack([bq, bo, g1, be1, b2, g2, be2,
                               jnp.zeros((D,), jnp.float32)]))
        # (2, H) slab: [bk|bv], b1
        vecH.append(jnp.stack([jnp.concatenate([bk, bv]), b1]))
    return {
        "wqT": jnp.stack(wqT), "wkvT": jnp.stack(wkvT), "woT": jnp.stack(woT),
        "w1T": jnp.stack(w1T), "w2T": jnp.stack(w2T),
        "vecD": jnp.stack(vecD).astype(jnp.float32),
        "vecH": jnp.stack(vecH).astype(jnp.float32),
    }


def _reference(ego, other, params):
    """Pure-JAX f32 reference (mirrors the PyTorch CrossAttentionBlock stack)."""
    def ln(x, g, b, eps=1e-5):
        mu = jnp.mean(x, axis=-1, keepdims=True)
        var = jnp.mean((x - mu) ** 2, axis=-1, keepdims=True)
        return (x - mu) * jax.lax.rsqrt(var + eps) * g + b

    L = params["wqT"].shape[0]
    D = ego.shape[-1]
    x = ego
    for l in range(L):
        wqT = params["wqT"][l].astype(jnp.float32)
        wkvT = params["wkvT"][l].astype(jnp.float32)
        woT = params["woT"][l].astype(jnp.float32)
        w1T = params["w1T"][l].astype(jnp.float32)
        w2T = params["w2T"][l].astype(jnp.float32)
        vD, vH = params["vecD"][l], params["vecH"][l]
        bq, bo, g1, be1, b2, g2, be2 = vD[0], vD[1], vD[2], vD[3], vD[4], vD[5], vD[6]
        bkv, b1 = vH[0], vH[1]

        qp = x @ wqT + bq
        kvp = other @ wkvT + bkv
        kp, vp = kvp[..., :D], kvp[..., D:]
        s = jnp.einsum("bqd,bkd->bqk", qp, kp) / math.sqrt(D)
        a = jax.nn.softmax(s, axis=-1)
        attn = jnp.einsum("bqk,bkd->bqd", a, vp) @ woT + bo
        x1 = ln(x + attn, g1, be1)
        ffn = jnp.maximum(x1 @ w1T + b1, 0.0) @ w2T + b2
        x = ln(x1 + ffn, g2, be2)
    return x


if __name__ == "__main__":
    HIDDEN_DIM = 128          # module default (lane-aligned)
    N_BLOCKS = 1              # INTERATION_ENCODER_BLOCKS
    B, LQ, LK = 2, 8, 8

    root = jax.random.PRNGKey(0)
    k_ego, k_other, k_params = jax.random.split(root, 3)
    ego = jax.random.normal(k_ego, (B, LQ, HIDDEN_DIM), jnp.float32)
    other = jax.random.normal(k_other, (B, LK, HIDDEN_DIM), jnp.float32)
    params = init_params(k_params, N_BLOCKS, HIDDEN_DIM)

    out = interaction_encoder(ego, other, params)
    out = jax.block_until_ready(out)

    ref = _reference(ego, other, params)
    assert out.shape == (B, LQ, HIDDEN_DIM)
    # bf16 MXU operands + approx reciprocal -> looser tolerance vs f32 reference
    max_err = float(jnp.max(jnp.abs(out - ref)))
    assert max_err < 5e-2, f"mismatch vs reference: max abs err {max_err}"

    print("KERNEL_OK")
</pallas_src>

<mosaic_0001>
module attributes {stable_mosaic.version = 11 : i64} {
  func.func @_fused_encoder_kernel(%arg0: i32, %arg1: memref<2x8x128xf32, #tpu.memory_space<vmem>>, %arg2: memref<2x8x128xf32, #tpu.memory_space<vmem>>, %arg3: memref<1x128x128xbf16, #tpu.memory_space<vmem>>, %arg4: memref<1x128x256xbf16, #tpu.memory_space<vmem>>, %arg5: memref<1x128x128xbf16, #tpu.memory_space<vmem>>, %arg6: memref<1x128x256xbf16, #tpu.memory_space<vmem>>, %arg7: memref<1x256x128xbf16, #tpu.memory_space<vmem>>, %arg8: memref<1x8x128xf32, #tpu.memory_space<vmem>>, %arg9: memref<1x2x256xf32, #tpu.memory_space<vmem>>, %arg10: memref<2x8x128xf32, #tpu.memory_space<vmem>>, %arg11: memref<2x8x128xf32, #tpu.memory_space<vmem>>) attributes {dimension_semantics = [#tpu.dimension_semantics<arbitrary>], iteration_bounds = array<i64: 1>, scalar_prefetch = 0 : i64, scratch_operands = 1 : i64, tpu.core_type = #tpu.core_type<tc>, window_params = [{pipeline_mode = #tpu.pipeline_mode<synchronous>, transform_indices = @transform_0, window_bounds = array<i64: 2, 8, 128>}, {pipeline_mode = #tpu.pipeline_mode<synchronous>, transform_indices = @transform_1, window_bounds = array<i64: 2, 8, 128>}, {transform_indices = @transform_2, window_bounds = array<i64: 1, 128, 128>}, {transform_indices = @transform_3, window_bounds = array<i64: 1, 128, 256>}, {transform_indices = @transform_4, window_bounds = array<i64: 1, 128, 128>}, {transform_indices = @transform_5, window_bounds = array<i64: 1, 128, 256>}, {transform_indices = @transform_6, window_bounds = array<i64: 1, 256, 128>}, {transform_indices = @transform_7, window_bounds = array<i64: 1, 8, 128>}, {transform_indices = @transform_8, window_bounds = array<i64: 1, 2, 256>}, {pipeline_mode = #tpu.pipeline_mode<synchronous>, transform_indices = @transform_9, window_bounds = array<i64: 2, 8, 128>}]} {
    %c0_i32 = arith.constant 0 : i32
    %0 = arith.cmpi eq, %arg0, %c0_i32 : i32
    %1 = arith.extui %0 : i1 to i32
    %c0_i32_0 = arith.constant 0 : i32
    %2 = arith.cmpi ne, %1, %c0_i32_0 : i32
    scf.if %2 {
      %c0_67 = arith.constant 0 : index
      %c0_68 = arith.constant 0 : index
      %c0_69 = arith.constant 0 : index
      %132 = vector.load %arg1[%c0_67, %c0_68, %c0_69] : memref<2x8x128xf32, #tpu.memory_space<vmem>>, vector<2x8x128xf32>
      %c0_70 = arith.constant 0 : index
      %c0_71 = arith.constant 0 : index
      %c0_72 = arith.constant 0 : index
      %133 = vector.load %arg11[%c0_70, %c0_71, %c0_72] : memref<2x8x128xf32, #tpu.memory_space<vmem>>, vector<2x8x128xf32>
      tpu.vector_store %arg11[%c0_70, %c0_71, %c0_72], %132 {strides = array<i32>} : memref<2x8x128xf32, #tpu.memory_space<vmem>>, vector<2x8x128xf32>,
    } else {
    }
    %c0 = arith.constant 0 : index
    %c0_1 = arith.constant 0 : index
    %c0_2 = arith.constant 0 : index
    %3 = vector.load %arg11[%c0, %c0_1, %c0_2] : memref<2x8x128xf32, #tpu.memory_space<vmem>>, vector<2x8x128xf32>
    %4 = vector.shape_cast %3 : vector<2x8x128xf32> to vector<16x128xf32>
    %c0_3 = arith.constant 0 : index
    %c0_4 = arith.constant 0 : index
    %c0_5 = arith.constant 0 : index
    %5 = vector.load %arg2[%c0_3, %c0_4, %c0_5] : memref<2x8x128xf32, #tpu.memory_space<vmem>>, vector<2x8x128xf32>
    %6 = vector.shape_cast %5 : vector<2x8x128xf32> to vector<16x128xf32>
    %7 = arith.truncf %6 : vector<16x128xf32> to vector<16x128xbf16>
    %c0_6 = arith.constant 0 : index
    %c0_7 = arith.constant 0 : index
    %c0_8 = arith.constant 0 : index
    %8 = vector.load %arg8[%c0_6, %c0_7, %c0_8] : memref<1x8x128xf32, #tpu.memory_space<vmem>>, vector<1x1x128xf32>
    %9 = vector.shape_cast %8 : vector<1x1x128xf32> to vector<1x128xf32>
    %c0_9 = arith.constant 0 : index
    %c1 = arith.constant 1 : index
    %c0_10 = arith.constant 0 : index
    %10 = vector.load %arg8[%c0_9, %c1, %c0_10] : memref<1x8x128xf32, #tpu.memory_space<vmem>>, vector<1x1x128xf32>
    %11 = vector.shape_cast %10 : vector<1x1x128xf32> to vector<1x128xf32>
    %c0_11 = arith.constant 0 : index
    %c2 = arith.constant 2 : index
    %c0_12 = arith.constant 0 : index
    %12 = vector.load %arg8[%c0_11, %c2, %c0_12] : memref<1x8x128xf32, #tpu.memory_space<vmem>>, vector<1x1x128xf32>
    %13 = vector.shape_cast %12 : vector<1x1x128xf32> to vector<1x128xf32>
    %c0_13 = arith.constant 0 : index
    %c3 = arith.constant 3 : index
    %c0_14 = arith.constant 0 : index
    %14 = vector.load %arg8[%c0_13, %c3, %c0_14] : memref<1x8x128xf32, #tpu.memory_space<vmem>>, vector<1x1x128xf32>
    %15 = vector.shape_cast %14 : vector<1x1x128xf32> to vector<1x128xf32>
    %c0_15 = arith.constant 0 : index
    %c4 = arith.constant 4 : index
    %c0_16 = arith.constant 0 : index
    %16 = vector.load %arg8[%c0_15, %c4, %c0_16] : memref<1x8x128xf32, #tpu.memory_space<vmem>>, vector<1x1x128xf32>
    %17 = vector.shape_cast %16 : vector<1x1x128xf32> to vector<1x128xf32>
    %c0_17 = arith.constant 0 : index
    %c5 = arith.constant 5 : index
    %c0_18 = arith.constant 0 : index
    %18 = vector.load %arg8[%c0_17, %c5, %c0_18] : memref<1x8x128xf32, #tpu.memory_space<vmem>>, vector<1x1x128xf32>
    %19 = vector.shape_cast %18 : vector<1x1x128xf32> to vector<1x128xf32>
    %c0_19 = arith.constant 0 : index
    %c6 = arith.constant 6 : index
    %c0_20 = arith.constant 0 : index
    %20 = vector.load %arg8[%c0_19, %c6, %c0_20] : memref<1x8x128xf32, #tpu.memory_space<vmem>>, vector<1x1x128xf32>
    %21 = vector.shape_cast %20 : vector<1x1x128xf32> to vector<1x128xf32>
    %c0_21 = arith.constant 0 : index
    %c0_22 = arith.constant 0 : index
    %c0_23 = arith.constant 0 : index
    %22 = vector.load %arg9[%c0_21, %c0_22, %c0_23] : memref<1x2x256xf32, #tpu.memory_space<vmem>>, vector<1x1x256xf32>
    %23 = vector.shape_cast %22 : vector<1x1x256xf32> to vector<1x256xf32>
    %c0_24 = arith.constant 0 : index
    %c1_25 = arith.constant 1 : index
    %c0_26 = arith.constant 0 : index
    %24 = vector.load %arg9[%c0_24, %c1_25, %c0_26] : memref<1x2x256xf32, #tpu.memory_space<vmem>>, vector<1x1x256xf32>
    %25 = vector.shape_cast %24 : vector<1x1x256xf32> to vector<1x256xf32>
    %26 = arith.truncf %4 : vector<16x128xf32> to vector<16x128xbf16>
    %c0_27 = arith.constant 0 : index
    %c0_28 = arith.constant 0 : index
    %c0_29 = arith.constant 0 : index
    %27 = vector.load %arg3[%c0_27, %c0_28, %c0_29] : memref<1x128x128xbf16, #tpu.memory_space<vmem>>, vector<1x128x128xbf16>
    %28 = vector.shape_cast %27 : vector<1x128x128xbf16> to vector<128x128xbf16>
    %cst = arith.constant dense<0.000000e+00> : vector<16x128xf32>
    %29 = tpu.matmul %26, %28, %cst {dimension_numbers = #tpu.dot_dimension_numbers<[1], [0], [0], [1], [0, 0, 1, 1], [], []>} : vector<16x128xbf16>, vector<128x128xbf16>, vector<16x128xf32> -> vector<16x128xf32>
    %30 = vector.broadcast %9 : vector<1x128xf32> to vector<16x128xf32>
    %31 = arith.addf %29, %30 : vector<16x128xf32>
    %c0_30 = arith.constant 0 : index
    %c0_31 = arith.constant 0 : index
    %c0_32 = arith.constant 0 : index
    %32 = vector.load %arg4[%c0_30, %c0_31, %c0_32] : memref<1x128x256xbf16, #tpu.memory_space<vmem>>, vector<1x128x256xbf16>
    %33 = vector.shape_cast %32 : vector<1x128x256xbf16> to vector<128x256xbf16>
    %cst_33 = arith.constant dense<0.000000e+00> : vector<16x256xf32>
    %34 = tpu.matmul %7, %33, %cst_33 {dimension_numbers = #tpu.dot_dimension_numbers<[1], [0], [0], [1], [0, 0, 1, 1], [], []>} : vector<16x128xbf16>, vector<128x256xbf16>, vector<16x256xf32> -> vector<16x256xf32>
    %35 = vector.broadcast %23 : vector<1x256xf32> to vector<16x256xf32>
    %36 = arith.addf %34, %35 : vector<16x256xf32>
    %37 = vector.shape_cast %31 : vector<16x128xf32> to vector<2x8x128xf32>
    %38 = vector.extract_strided_slice %36 {offsets = [0, 0], sizes = [16, 128], strides = [1, 1]} : vector<16x256xf32> to vector<16x128xf32>
    %39 = vector.shape_cast %38 : vector<16x128xf32> to vector<2x8x128xf32>
    %40 = vector.extract_strided_slice %36 {offsets = [0, 128], sizes = [16, 128], strides = [1, 1]} : vector<16x256xf32> to vector<16x128xf32>
    %41 = vector.shape_cast %40 : vector<16x128xf32> to vector<2x8x128xf32>
    %42 = arith.truncf %37 : vector<2x8x128xf32> to vector<2x8x128xbf16>
    %43 = arith.truncf %39 : vector<2x8x128xf32> to vector<2x8x128xbf16>
    "tpu.trace_start"() <{level = 10 : i32, message = "bqd,bkd->bqk"}> : () -> ()
    %cst_34 = arith.constant dense<0.000000e+00> : vector<2x8x8xf32>
    %44 = tpu.matmul %42, %43, %cst_34 {dimension_numbers = #tpu.dot_dimension_numbers<[2], [2], [1], [1], [0, 0, 0, 1, 1, 1], [0], [0]>} : vector<2x8x128xbf16>, vector<2x8x128xbf16>, vector<2x8x8xf32> -> vector<2x8x8xf32>
    "tpu.trace_stop"() : () -> ()
    %cst_35 = arith.constant 0.0883883461 : f32
    %45 = vector.broadcast %cst_35 : f32 to vector<2x8x8xf32>
    %46 = arith.mulf %44, %45 : vector<2x8x8xf32>
    %cst_36 = arith.constant dense<0xFF800000> : vector<2x8xf32>
    %47 = vector.multi_reduction <maximumf>, %46, %cst_36 [2] : vector<2x8x8xf32> to vector<2x8xf32>
    %48 = vector.shape_cast %47 : vector<2x8xf32> to vector<2x8x1xf32>
    %49 = vector.broadcast %48 : vector<2x8x1xf32> to vector<2x8x8xf32>
    %50 = arith.subf %46, %49 : vector<2x8x8xf32>
    %51 = math.exp %50 : vector<2x8x8xf32>
    %cst_37 = arith.constant dense<0.000000e+00> : vector<2x8xf32>
    %52 = vector.multi_reduction <add>, %51, %cst_37 [2] : vector<2x8x8xf32> to vector<2x8xf32>
    %53 = vector.shape_cast %52 : vector<2x8xf32> to vector<2x8x1xf32>
    %54 = tpu.reciprocal %53 {approx = true} : vector<2x8x1xf32> -> vector<2x8x1xf32>
    %55 = vector.broadcast %54 : vector<2x8x1xf32> to vector<2x8x8xf32>
    %56 = arith.mulf %51, %55 : vector<2x8x8xf32>
    %57 = arith.truncf %56 : vector<2x8x8xf32> to vector<2x8x8xbf16>
    %58 = arith.truncf %41 : vector<2x8x128xf32> to vector<2x8x128xbf16>
    "tpu.trace_start"() <{level = 10 : i32, message = "bqk,bkd->bqd"}> : () -> ()
    %cst_38 = arith.constant dense<0.000000e+00> : vector<2x8x128xf32>
    %59 = tpu.matmul %57, %58, %cst_38 {dimension_numbers = #tpu.dot_dimension_numbers<[2], [1], [1], [2], [0, 0, 0, 1, 1, 2], [0], [0]>} : vector<2x8x8xbf16>, vector<2x8x128xbf16>, vector<2x8x128xf32> -> vector<2x8x128xf32>
    "tpu.trace_stop"() : () -> ()
    %60 = vector.shape_cast %59 : vector<2x8x128xf32> to vector<16x128xf32>
    %61 = arith.truncf %60 : vector<16x128xf32> to vector<16x128xbf16>
    %c0_39 = arith.constant 0 : index
    %c0_40 = arith.constant 0 : index
    %c0_41 = arith.constant 0 : index
    %62 = vector.load %arg5[%c0_39, %c0_40, %c0_41] : memref<1x128x128xbf16, #tpu.memory_space<vmem>>, vector<1x128x128xbf16>
    %63 = vector.shape_cast %62 : vector<1x128x128xbf16> to vector<128x128xbf16>
    %cst_42 = arith.constant dense<0.000000e+00> : vector<16x128xf32>
    %64 = tpu.matmul %61, %63, %cst_42 {dimension_numbers = #tpu.dot_dimension_numbers<[1], [0], [0], [1], [0, 0, 1, 1], [], []>} : vector<16x128xbf16>, vector<128x128xbf16>, vector<16x128xf32> -> vector<16x128xf32>
    %65 = vector.broadcast %11 : vector<1x128xf32> to vector<16x128xf32>
    %66 = arith.addf %64, %65 : vector<16x128xf32>
    %67 = arith.addf %4, %66 : vector<16x128xf32>
    %cst_43 = arith.constant dense<0.000000e+00> : vector<16xf32>
    %68 = vector.multi_reduction <add>, %67, %cst_43 [1] : vector<16x128xf32> to vector<16xf32>
    %69 = vector.shape_cast %68 : vector<16xf32> to vector<16x1xf32>
    %cst_44 = arith.constant 1.280000e+02 : f32
    %70 = vector.broadcast %cst_44 : f32 to vector<16x1xf32>
    %71 = arith.divf %69, %70 : vector<16x1xf32>
    %72 = arith.mulf %67, %67 : vector<16x128xf32>
    %cst_45 = arith.constant dense<0.000000e+00> : vector<16xf32>
    %73 = vector.multi_reduction <add>, %72, %cst_45 [1] : vector<16x128xf32> to vector<16xf32>
    %74 = vector.shape_cast %73 : vector<16xf32> to vector<16x1xf32>
    %cst_46 = arith.constant 1.280000e+02 : f32
    %75 = vector.broadcast %cst_46 : f32 to vector<16x1xf32>
    %76 = arith.divf %74, %75 : vector<16x1xf32>
    %77 = arith.mulf %71, %71 : vector<16x1xf32>
    %78 = arith.subf %76, %77 : vector<16x1xf32>
    %79 = vector.broadcast %71 : vector<16x1xf32> to vector<16x128xf32>
    %80 = arith.subf %67, %79 : vector<16x128xf32>
    %cst_47 = arith.constant 9.99999974E-6 : f32
    %81 = vector.broadcast %cst_47 : f32 to vector<16x1xf32>
    %82 = arith.addf %78, %81 : vector<16x1xf32>
    %83 = math.rsqrt %82 : vector<16x1xf32>
    %84 = vector.broadcast %83 : vector<16x1xf32> to vector<16x128xf32>
    %85 = arith.mulf %80, %84 : vector<16x128xf32>
    %86 = vector.broadcast %13 : vector<1x128xf32> to vector<16x128xf32>
    %87 = arith.mulf %85, %86 : vector<16x128xf32>
    %88 = vector.broadcast %15 : vector<1x128xf32> to vector<16x128xf32>
    %89 = arith.addf %87, %88 : vector<16x128xf32>
    %90 = arith.truncf %89 : vector<16x128xf32> to vector<16x128xbf16>
    %c0_48 = arith.constant 0 : index
    %c0_49 = arith.constant 0 : index
    %c0_50 = arith.constant 0 : index
    %91 = vector.load %arg6[%c0_48, %c0_49, %c0_50] : memref<1x128x256xbf16, #tpu.memory_space<vmem>>, vector<1x128x256xbf16>
    %92 = vector.shape_cast %91 : vector<1x128x256xbf16> to vector<128x256xbf16>
    %cst_51 = arith.constant dense<0.000000e+00> : vector<16x256xf32>
    %93 = tpu.matmul %90, %92, %cst_51 {dimension_numbers = #tpu.dot_dimension_numbers<[1], [0], [0], [1], [0, 0, 1, 1], [], []>} : vector<16x128xbf16>, vector<128x256xbf16>, vector<16x256xf32> -> vector<16x256xf32>
    %94 = vector.broadcast %25 : vector<1x256xf32> to vector<16x256xf32>
    %95 = arith.addf %93, %94 : vector<16x256xf32>
    %cst_52 = arith.constant 0.000000e+00 : f32
    %96 = vector.broadcast %cst_52 : f32 to vector<16x256xf32>
    %97 = arith.maximumf %95, %96 : vector<16x256xf32>
    %98 = arith.truncf %97 : vector<16x256xf32> to vector<16x256xbf16>
    %c0_53 = arith.constant 0 : index
    %c0_54 = arith.constant 0 : index
    %c0_55 = arith.constant 0 : index
    %99 = vector.load %arg7[%c0_53, %c0_54, %c0_55] : memref<1x256x128xbf16, #tpu.memory_space<vmem>>, vector<1x256x128xbf16>
    %100 = vector.shape_cast %99 : vector<1x256x128xbf16> to vector<256x128xbf16>
    %cst_56 = arith.constant dense<0.000000e+00> : vector<16x128xf32>
    %101 = tpu.matmul %98, %100, %cst_56 {dimension_numbers = #tpu.dot_dimension_numbers<[1], [0], [0], [1], [0, 0, 1, 1], [], []>} : vector<16x256xbf16>, vector<256x128xbf16>, vector<16x128xf32> -> vector<16x128xf32>
    %102 = vector.broadcast %17 : vector<1x128xf32> to vector<16x128xf32>
    %103 = arith.addf %101, %102 : vector<16x128xf32>
    %104 = arith.addf %89, %103 : vector<16x128xf32>
    %cst_57 = arith.constant dense<0.000000e+00> : vector<16xf32>
    %105 = vector.multi_reduction <add>, %104, %cst_57 [1] : vector<16x128xf32> to vector<16xf32>
    %106 = vector.shape_cast %105 : vector<16xf32> to vector<16x1xf32>
    %cst_58 = arith.constant 1.280000e+02 : f32
    %107 = vector.broadcast %cst_58 : f32 to vector<16x1xf32>
    %108 = arith.divf %106, %107 : vector<16x1xf32>
    %109 = arith.mulf %104, %104 : vector<16x128xf32>
    %cst_59 = arith.constant dense<0.000000e+00> : vector<16xf32>
    %110 = vector.multi_reduction <add>, %109, %cst_59 [1] : vector<16x128xf32> to vector<16xf32>
    %111 = vector.shape_cast %110 : vector<16xf32> to vector<16x1xf32>
    %cst_60 = arith.constant 1.280000e+02 : f32
    %112 = vector.broadcast %cst_60 : f32 to vector<16x1xf32>
    %113 = arith.divf %111, %112 : vector<16x1xf32>
    %114 = arith.mulf %108, %108 : vector<16x1xf32>
    %115 = arith.subf %113, %114 : vector<16x1xf32>
    %116 = vector.broadcast %108 : vector<16x1xf32> to vector<16x128xf32>
    %117 = arith.subf %104, %116 : vector<16x128xf32>
    %cst_61 = arith.constant 9.99999974E-6 : f32
    %118 = vector.broadcast %cst_61 : f32 to vector<16x1xf32>
    %119 = arith.addf %115, %118 : vector<16x1xf32>
    %120 = math.rsqrt %119 : vector<16x1xf32>
    %121 = vector.broadcast %120 : vector<16x1xf32> to vector<16x128xf32>
    %122 = arith.mulf %117, %121 : vector<16x128xf32>
    %123 = vector.broadcast %19 : vector<1x128xf32> to vector<16x128xf32>
    %124 = arith.mulf %122, %123 : vector<16x128xf32>
    %125 = vector.broadcast %21 : vector<1x128xf32> to vector<16x128xf32>
    %126 = arith.addf %124, %125 : vector<16x128xf32>
    %127 = vector.shape_cast %126 : vector<16x128xf32> to vector<2x8x128xf32>
    %c0_62 = arith.constant 0 : index
    %c0_63 = arith.constant 0 : index
    %c0_64 = arith.constant 0 : index
    %128 = vector.load %arg11[%c0_62, %c0_63, %c0_64] : memref<2x8x128xf32, #tpu.memory_space<vmem>>, vector<2x8x128xf32>
    tpu.vector_store %arg11[%c0_62, %c0_63, %c0_64], %127 {strides = array<i32>} : memref<2x8x128xf32, #tpu.memory_space<vmem>>, vector<2x8x128xf32>,
    %c0_i32_65 = arith.constant 0 : i32
    %129 = arith.cmpi eq, %arg0, %c0_i32_65 : i32
    %130 = arith.extui %129 : i1 to i32
    %c0_i32_66 = arith.constant 0 : i32
    %131 = arith.cmpi ne, %130, %c0_i32_66 : i32
    scf.if %131 {
      %132 = vector.shape_cast %126 : vector<16x128xf32> to vector<2x8x128xf32>
      %c0_67 = arith.constant 0 : index
      %c0_68 = arith.constant 0 : index
      %c0_69 = arith.constant 0 : index
      %133 = vector.load %arg10[%c0_67, %c0_68, %c0_69] : memref<2x8x128xf32, #tpu.memory_space<vmem>>, vector<2x8x128xf32>
      tpu.vector_store %arg10[%c0_67, %c0_68, %c0_69], %132 {strides = array<i32>} : memref<2x8x128xf32, #tpu.memory_space<vmem>>, vector<2x8x128xf32>,
    } else {
    }
    return
  }
  func.func @transform_0(%arg0: i32) -> (i32, i32, i32) {
    %c0_i32 = arith.constant 0 : i32
    %c0_i32_0 = arith.constant 0 : i32
    %c0_i32_1 = arith.constant 0 : i32
    %c0_i32_2 = arith.constant 0 : i32
    return %c0_i32, %c0_i32_0, %c0_i32_1 : i32, i32, i32
  }
  func.func @transform_1(%arg0: i32) -> (i32, i32, i32) {
    %c0_i32 = arith.constant 0 : i32
    %c0_i32_0 = arith.constant 0 : i32
    %c0_i32_1 = arith.constant 0 : i32
    %c0_i32_2 = arith.constant 0 : i32
    return %c0_i32, %c0_i32_0, %c0_i32_1 : i32, i32, i32
  }
  func.func @transform_2(%arg0: i32) -> (i32, i32, i32) {
    %c0_i32 = arith.constant 0 : i32
    %c0_i32_0 = arith.constant 0 : i32
    %c0_i32_1 = arith.constant 0 : i32
    return %arg0, %c0_i32, %c0_i32_0 : i32, i32, i32
  }
  func.func @transform_3(%arg0: i32) -> (i32, i32, i32) {
    %c0_i32 = arith.constant 0 : i32
    %c0_i32_0 = arith.constant 0 : i32
    %c0_i32_1 = arith.constant 0 : i32
    return %arg0, %c0_i32, %c0_i32_0 : i32, i32, i32
  }
  func.func @transform_4(%arg0: i32) -> (i32, i32, i32) {
    %c0_i32 = arith.constant 0 : i32
    %c0_i32_0 = arith.constant 0 : i32
    %c0_i32_1 = arith.constant 0 : i32
    return %arg0, %c0_i32, %c0_i32_0 : i32, i32, i32
  }
  func.func @transform_5(%arg0: i32) -> (i32, i32, i32) {
    %c0_i32 = arith.constant 0 : i32
    %c0_i32_0 = arith.constant 0 : i32
    %c0_i32_1 = arith.constant 0 : i32
    return %arg0, %c0_i32, %c0_i32_0 : i32, i32, i32
  }
  func.func @transform_6(%arg0: i32) -> (i32, i32, i32) {
    %c0_i32 = arith.constant 0 : i32
    %c0_i32_0 = arith.constant 0 : i32
    %c0_i32_1 = arith.constant 0 : i32
    return %arg0, %c0_i32, %c0_i32_0 : i32, i32, i32
  }
  func.func @transform_7(%arg0: i32) -> (i32, i32, i32) {
    %c0_i32 = arith.constant 0 : i32
    %c0_i32_0 = arith.constant 0 : i32
    %c0_i32_1 = arith.constant 0 : i32
    return %arg0, %c0_i32, %c0_i32_0 : i32, i32, i32
  }
  func.func @transform_8(%arg0: i32) -> (i32, i32, i32) {
    %c0_i32 = arith.constant 0 : i32
    %c0_i32_0 = arith.constant 0 : i32
    %c0_i32_1 = arith.constant 0 : i32
    return %arg0, %c0_i32, %c0_i32_0 : i32, i32, i32
  }
  func.func @transform_9(%arg0: i32) -> (i32, i32, i32) {
    %c0_i32 = arith.constant 0 : i32
    %c0_i32_0 = arith.constant 0 : i32
    %c0_i32_1 = arith.constant 0 : i32
    %c0_i32_2 = arith.constant 0 : i32
    return %c0_i32, %c0_i32_0, %c0_i32_1 : i32, i32, i32
  }
}

</mosaic_0001>

<bundles_post_ra>
// kernel: tpu_custom_call.1
= control target key start
LH: loop header
LB: loop body
LE: loop exit
PB: predicated region body
PF: predicated region fallthrough
CT: control target
= control target key end

     0   :  { %14 = vsyncpa [#allocation4], 0  ;;  %s1839_s0 = inlined_call_operand.hbm [shape: f32[2,8,128], index: 0, kind: input, shape index: {}]   ;;  %s1840_s1 = inlined_call_operand.hbm [shape: f32[2,8,128], index: 1, kind: input, shape index: {}]   ;;  %s1841_s2 = inlined_call_operand.hbm [shape: bf16[1,128,128], index: 2, kind: input, shape index: {}]   ;;  %s1842_s3 = inlined_call_operand.hbm [shape: bf16[1,128,256], index: 3, kind: input, shape index: {}]   ;;  %s1843_s4 = inlined_call_operand.hbm [shape: bf16[1,128,128], index: 4, kind: input, shape index: {}]   ;;  %s1844_s5 = inlined_call_operand.hbm [shape: bf16[1,128,256], index: 5, kind: input, shape index: {}]   ;;  %s1845_s6 = inlined_call_operand.hbm [shape: bf16[1,256,128], index: 6, kind: input, shape index: {}]   ;;  %s1846_s7 = inlined_call_operand.vmem [shape: f32[1,8,128], index: 7, kind: input, shape index: {}]   ;;  %s1847_s8 = inlined_call_operand.vmem [shape: f32[1,2,256], index: 8, kind: input, shape index: {}]   ;;  %s1848_s9 = inlined_call_operand.hbm [shape: f32[2,8,128], index: 9, kind: output, shape index: {}]  }
   0x1   :  { %15 = vsyncpa [#allocation7], 0 }
   0x2   :  { %16 = vsyncpa [#allocation10], 0 }
   0x3   :  { %17 = vsyncpa [#allocation13], 0 }
   0x4   :  { %18 = vsyncpa [#allocation5], 0  ;;  %s1633_s30 = smov [#allocation6]   ;;  %s1634_s11 = smov [#allocation9]  }
   0x5   :  { %s36_s10 = sshll.u32 %s1633_s30, 4  ;;  %s60_s12 = sshll.u32 %s1634_s11, 4  ;;  %s37_s10 = int_to_ptr.vmem [resolvable:$true] %s36_s10  ;;  %s61_s12 = int_to_ptr.vmem [resolvable:$true] %s60_s12 }
   0x6   :  { %s1471_s13 = scalar_lea.vmem %s37_s10, 256  ;;  %p1476_p1 = scmp.lt.s32.totalorder %s37_s10, %s37_s10 }
   0x7   :  { %p1472_p0 = scmp.ne.s32.totalorder %s37_s10, %s1471_s13  ;;  %p1477_p2 = scmp.lt.s32.totalorder %s1471_s13, %s1471_s13 }
   0x9   :  { %p1478_p3 = por %p1477_p2, %p1476_p1 }
   0xb   :  { %p1479_p4 = pnand %p1478_p3, %p1472_p0 }
   0xd   :  { %1482 = shalt.err (!%p1479_p4)
}
   0xe   :  { %s1635_s14 = smov 128   ;;  %s1636_s15 = smov 8  }
   0xf   :  { %42 = dma.hbm_to_vmem [thread:$0]  %s1840_s1, 256, %s37_s10, [#allocation7], %s1635_s14, %s1635_s14, %s1636_s15  }
  0x10   :  { %s1491_s18 = scalar_lea.vmem %s61_s12, 2048  ;;  %p1496_p6 = scmp.lt.s32.totalorder %s61_s12, %s61_s12 }
  0x11   :  { %p1492_p5 = scmp.ne.s32.totalorder %s61_s12, %s1491_s18  ;;  %p1497_p7 = scmp.lt.s32.totalorder %s1491_s18, %s1491_s18 }
  0x13   :  { %p1498_p8 = por %p1497_p7, %p1496_p6 }
  0x15   :  { %p1499_p9 = pnand %p1498_p8, %p1492_p5 }
  0x17   :  { %1502 = shalt.err (!%p1499_p9)
}
  0x18   :  { %66 = dma.hbm_to_vmem [thread:$0]  %s1842_s3, 2048, %s61_s12, [#allocation10], %s1635_s14, %s1635_s14, %s1636_s15  }
  0x19   :  { %s1637_s21 = smov [#allocation12]   ;;  %s1638_s23 = smov [#allocation3]  }
  0x1a   :  { %s84_s22 = sshll.u32 %s1637_s21, 4  ;;  %s24_s24 = sshll.u32 %s1638_s23, 4  ;;  %s85_s22 = int_to_ptr.vmem [resolvable:$true] %s84_s22  ;;  %s25_s24 = int_to_ptr.vmem [resolvable:$true] %s24_s24 }
  0x1b   :  { %s1511_s1 = scalar_lea.vmem %s85_s22, 2048  ;;  %p1516_p11 = scmp.lt.s32.totalorder %s85_s22, %s85_s22 }
  0x1c   :  { %p1512_p10 = scmp.ne.s32.totalorder %s85_s22, %s1511_s1  ;;  %p1517_p12 = scmp.lt.s32.totalorder %s1511_s1, %s1511_s1 }
  0x1e   :  { %p1518_p13 = por %p1517_p12, %p1516_p11 }
  0x20   :  { %p1519_p0 = pnand %p1518_p13, %p1512_p10 }
  0x22   :  { %1522 = shalt.err (!%p1519_p0)
}
  0x23   :  { %90 = dma.hbm_to_vmem [thread:$0]  %s1844_s5, 2048, %s85_s22, [#allocation13], %s1635_s14, %s1635_s14, %s1636_s15  }
  0x24   :  { %s1531_s3 = scalar_lea.vmem %s25_s24, 256  ;;  %p1536_p2 = scmp.lt.s32.totalorder %s25_s24, %s25_s24 }
  0x25   :  { %p1532_p1 = scmp.ne.s32.totalorder %s25_s24, %s1531_s3  ;;  %p1537_p3 = scmp.lt.s32.totalorder %s1531_s3, %s1531_s3 }
  0x27   :  { %p1538_p4 = por %p1537_p3, %p1536_p2 }
  0x29   :  { %p1539_p5 = pnand %p1538_p4, %p1532_p1 }
  0x2b   :  { %1542 = shalt.err (!%p1539_p5)
}
  0x2c   :  { %30 = dma.hbm_to_vmem [thread:$0]  %s1839_s0, 256, %s25_s24, [#allocation4], %s1635_s14, %s1635_s14, %s1636_s15  }
  0x2d   :  { %s1639_s29 = smov [#allocation8]  }
  0x2e   :  { %s48_s30 = sshll.u32 %s1639_s29, 4  ;;  %s49_s30 = int_to_ptr.vmem [resolvable:$true] %s48_s30 }
  0x2f   :  { %s1551_s10 = scalar_lea.vmem %s49_s30, 1024  ;;  %p1556_p7 = scmp.lt.s32.totalorder %s49_s30, %s49_s30 }
  0x30   :  { %p1552_p6 = scmp.ne.s32.totalorder %s49_s30, %s1551_s10  ;;  %p1557_p8 = scmp.lt.s32.totalorder %s1551_s10, %s1551_s10 }
  0x32   :  { %p1558_p9 = por %p1557_p8, %p1556_p7 }
  0x34   :  { %p1559_p10 = pnand %p1558_p9, %p1552_p6 }
  0x36   :  { %1562 = shalt.err (!%p1559_p10)
}
  0x37   :  { %s1640_s5 = smov 64   ;;  %s1641_s11 = smov 4  }
  0x38   :  { %54 = dma.hbm_to_vmem [thread:$0]  %s1841_s2, 1024, %s49_s30, [#allocation7], %s1640_s5, %s1640_s5, %s1641_s11  }
  0x39   :  { %s1642_s16 = smov [#allocation11]   ;;  %s1643_s0 = smov [#allocation14]  }
  0x3a   :  { %s72_s17 = sshll.u32 %s1642_s16, 4  ;;  %s96_s18 = sshll.u32 %s1643_s0, 4  ;;  %s73_s17 = int_to_ptr.vmem [resolvable:$true] %s72_s17  ;;  %s97_s18 = int_to_ptr.vmem [resolvable:$true] %s96_s18 }
  0x3b   :  { %s1571_s19 = scalar_lea.vmem %s73_s17, 1024  ;;  %p1576_p12 = scmp.lt.s32.totalorder %s73_s17, %s73_s17 }
  0x3c   :  { %p1572_p11 = scmp.ne.s32.totalorder %s73_s17, %s1571_s19  ;;  %p1577_p13 = scmp.lt.s32.totalorder %s1571_s19, %s1571_s19 }
  0x3e   :  { %p1578_p0 = por %p1577_p13, %p1576_p12 }
  0x40   :  { %p1579_p1 = pnand %p1578_p0, %p1572_p11 }
  0x42   :  { %1582 = shalt.err (!%p1579_p1)
}
  0x43   :  { %78 = dma.hbm_to_vmem [thread:$0]  %s1843_s4, 1024, %s73_s17, [#allocation10], %s1640_s5, %s1640_s5, %s1641_s11  }
  0x44   :  { %s1591_s22 = scalar_lea.vmem %s97_s18, 2048  ;;  %p1596_p3 = scmp.lt.s32.totalorder %s97_s18, %s97_s18 }
  0x45   :  { %p1592_p2 = scmp.ne.s32.totalorder %s97_s18, %s1591_s22  ;;  %p1597_p4 = scmp.lt.s32.totalorder %s1591_s22, %s1591_s22 }
  0x47   :  { %p1598_p5 = por %p1597_p4, %p1596_p3 }
  0x49   :  { %p1599_p6 = pnand %p1598_p5, %p1592_p2 }
  0x4b   :  { %1602 = shalt.err (!%p1599_p6)
}
  0x4c   :  { %102 = dma.hbm_to_vmem [thread:$0]  %s1845_s6, 2048, %s97_s18, [#allocation13], %s1640_s5, %s1640_s5, %s1641_s11  }
  0x4d   :  { %1623 = dma.done.wait [#allocation4], 256  }
  0x4e   :  { %1624 = vsyncadd [#allocation4], 4294967040 }
  0x4f   :  { %1625 = dma.done.wait [#allocation7], 1280  }
  0x50   :  { %1626 = vsyncadd [#allocation7], 4294966016 }
  0x51   :  { %1627 = dma.done.wait [#allocation10], 3072  }
  0x52   :  { %1628 = vsyncadd [#allocation10], 4294964224 }
  0x53   :  { %1629 = dma.done.wait [#allocation13], 4096  }
  0x54   :  { %1630 = vsyncadd [#allocation13], 4294963200  ;;  %v1644_v0 = vmov 0.0   ;;  %v1645_v1 = vmov 0   ;;  %vm1646_vm0 = vmmov 0   ;;  %v1370_v4 = vld [vmem:[#allocation8 + $0x38] sm:$0xff]   ;;  %v279_v32 = vlaneseq }
  0x55   :  { %1288 = vmatprep.subr.bf16.mxu0 %v1644_v0  ;;  %401 = vmatprep.mubr.bf16.mxu1 %v1645_v1  ;;  %v1367_v2 = vld [vmem:[#allocation9 + $0x74] ss:$8 sps:$4 sm:$0xff]   ;;  %v1369_v3 = vld [vmem:[#allocation9 + $0x70] ss:$8 sps:$4 sm:$0xff]   ;;  %v1371_v5 = vld [vmem:[#allocation9 + $0x64] ss:$8 sps:$4 sm:$0xff]  }
  0x56   :  { %1304 = vmatprep.mubr.msk.bf16.mxu0 %vm1646_vm0, %v1644_v0  ;;  %369 = vmatprep.subr.bf16.mxu1 %v1367_v2  ;;  %v1373_v6 = vld [vmem:[#allocation9 + $0x60] ss:$8 sps:$4 sm:$0xff]   ;;  %v1374_v7 = vld [vmem:[#allocation8 + $0x30] sm:$0xff]   ;;  %v1379_v11 = vld [vmem:[#allocation9 + $0x44] ss:$8 sps:$4 sm:$0xff]   ;;  %v1754_v33 = vshrl.u32 %v279_v32, 7 }
  0x57   :  { %370 = vmatpush1.bf16.msra.mxu1 %v1369_v3  ;;  %1289 = vmatpush3.bf16.msra.mxu0 %v1370_v4  ;;  %v1375_v8 = vld [vmem:[#allocation9 + $0x54] ss:$8 sps:$4 sm:$0xff]   ;;  %v1377_v9 = vld [vmem:[#allocation9 + $0x50] ss:$8 sps:$4 sm:$0xff]   ;;  %v1378_v10 = vld [vmem:[#allocation8 + $0x28] sm:$0xff]   ;;  %vm528_vm1 = vcmask 1043456  }
  0x58   :  { %371 = vmatprep.subr.bf16.mxu1 %v1371_v5  ;;  %1290 = vmatprep.subr.bf16.mxu0 %v1644_v0  ;;  %v1381_v12 = vld [vmem:[#allocation9 + $0x40] ss:$8 sps:$4 sm:$0xff]   ;;  %v1383_v14 = vld [vmem:[#allocation9 + $0x34] ss:$8 sps:$4 sm:$0xff]   ;;  %v1385_v15 = vld [vmem:[#allocation9 + $0x30] ss:$8 sps:$4 sm:$0xff]  }
  0x59   :  { %v1382_v13 = vld [vmem:[#allocation8 + $0x20] sm:$0xff]   ;;  %v1386_v16 = vld [vmem:[#allocation8 + $0x18] sm:$0xff]   ;;  %v1390_v19 = vld [vmem:[#allocation8 + $0x10] sm:$0xff]   ;;  %v281_v34 = vsub.s32 0, %v1754_v33  ;;  %v285_v41 = vsub.s32 1, %v1754_v33  ;;  %vm498_vm2 = vcmask 64512  }
  0x5a   :  { %v1387_v17 = vld [vmem:[#allocation9 + $0x24] ss:$8 sps:$4 sm:$0xff]   ;;  %v1389_v18 = vld [vmem:[#allocation9 + $0x20] ss:$8 sps:$4 sm:$0xff]   ;;  %v1391_v20 = vld [vmem:[#allocation9 + $0x14] ss:$8 sps:$4 sm:$0xff]  }
  0x5b   :  { %372 = vmatpush1.bf16.msra.mxu1 %v1373_v6  ;;  %1291 = vmatpush3.bf16.msra.mxu0 %v1374_v7  ;;  %v1393_v21 = vld [vmem:[#allocation9 + $0x10] ss:$8 sps:$4 sm:$0xff]   ;;  %v1394_v22 = vld [vmem:[#allocation8 + $0x8] sm:$0xff]   ;;  %v1398_v27 = vld [vmem:[#allocation8] sm:$0xff]   ;;  %s1647_s17 = smov [#allocation15]  }
  0x5c   :  { %373 = vmatprep.subr.bf16.mxu1 %v1375_v8  ;;  %1292 = vmatprep.subr.bf16.mxu0 %v1644_v0  ;;  %v1395_v23 = vld [vmem:[#allocation9 + $0x4] ss:$8 sps:$4 sm:$0xff]   ;;  %v1397_v24 = vld [vmem:[#allocation9] ss:$8 sps:$4 sm:$0xff]   ;;  %v139_v25 = vld [vmem:[#allocation6] sm:$0xff]  ;;  %s1151_s0 = sshll.u32 %s1647_s17, 4  ;;  %s1152_s0 = int_to_ptr.vmem [resolvable:$true] %s1151_s0 }
  0x5d   :  { %v140_v26 = vld [vmem:[#allocation6 + $0x8] sm:$0xff]  ;;  %v1741_v28 = vld [vmem:[#allocation3] sm:$0xff]  ;;  %v1743_v29 = vld [vmem:[#allocation3 + $0x8] sm:$0xff]  ;;  %s1603_s18 = scalar_lea.vmem %s1152_s0, 256  ;;  %p1608_p8 = scmp.lt.s32.totalorder %s1152_s0, %s1152_s0 }
  0x5e   :  { %v141_v30 = vpack.c.bf16 %v140_v26, %v139_v25  ;;  %v152_v31 = vpack.c.bf16 %v1743_v29, %v1741_v28  ;;  %v149_v35 = vld [vmem:[%s1847_s8] ss:$2 sm:$0x3]  ;;  %v1403_v26 = vld [vmem:[#allocation11 + $0x18] sm:$0xff]   ;;  %v1221_v33 = vld [vmem:[%s1846_s7 + $0x4] ss:$0 sm:$0xff]  ;;  %p1604_p7 = scmp.ne.s32.totalorder %s1152_s0, %s1603_s18  ;;  %p1609_p9 = scmp.lt.s32.totalorder %s1603_s18, %s1603_s18 }
  0x5f   :  { %374 = vmatpush1.bf16.msra.mxu1 %v1377_v9  ;;  %1293 = vmatpush3.bf16.msra.mxu0 %v1378_v10  ;;  %v282_v36 = vrot.slane %v149_v35, %v281_v34  ;;  %v1167_v39 = vld [vmem:[%s1846_s7] ss:$0 sm:$0xff]  ;;  %v286_v47 = vrot.slane %v149_v35, %v285_v41 }
  0x60   :  { %375 = vmatprep.subr.bf16.mxu1 %v1379_v11  ;;  %1294 = vmatprep.subr.bf16.mxu0 %v1644_v0  ;;  %v1402_v25 = vld [vmem:[#allocation11 + $0x20] sm:$0xff]   ;;  %p1610_p10 = por %p1609_p9, %p1608_p8 }
  0x62   :  { %p1611_p11 = pnand %p1610_p10, %p1604_p7 }
  0x63   :  { %376 = vmatpush1.bf16.msra.mxu1 %v1381_v12  ;;  %1295 = vmatpush3.bf16.msra.mxu0 %v1382_v13 }
  0x64   :  { %377 = vmatprep.subr.bf16.mxu1 %v1383_v14  ;;  %1296 = vmatprep.subr.bf16.mxu0 %v1644_v0 }
  0x67   :  { %378 = vmatpush1.bf16.msra.mxu1 %v1385_v15  ;;  %1297 = vmatpush3.bf16.msra.mxu0 %v1386_v16 }
  0x68   :  { %379 = vmatprep.subr.bf16.mxu1 %v1387_v17  ;;  %1298 = vmatprep.subr.bf16.mxu0 %v1644_v0 }
  0x6b   :  { %380 = vmatpush1.bf16.msra.mxu1 %v1389_v18  ;;  %1299 = vmatpush3.bf16.msra.mxu0 %v1390_v19 }
  0x6c   :  { %381 = vmatprep.subr.bf16.mxu1 %v1391_v20  ;;  %1300 = vmatprep.subr.bf16.mxu0 %v1644_v0 }
  0x6f   :  { %382 = vmatpush1.bf16.msra.mxu1 %v1393_v21  ;;  %1301 = vmatpush3.bf16.msra.mxu0 %v1394_v22  ;;  %v1399_v22 = vld [vmem:[#allocation11 + $0x38] sm:$0xff]  }
  0x70   :  { %383 = vmatprep.subr.bf16.mxu1 %v1395_v23  ;;  %1302 = vmatprep.subr.bf16.mxu0 %v1644_v0  ;;  %v1400_v23 = vld [vmem:[#allocation11 + $0x30] sm:$0xff]  }
  0x73   :  { %384 = vmatpush1.bf16.msra.mxu1 %v1397_v24  ;;  %1303 = vmatpush3.bf16.msra.mxu0 %v1398_v27  ;;  %v1401_v24 = vld [vmem:[#allocation11 + $0x28] sm:$0xff]  }
  0x74   :  { %1308 = vmatprep.subr.bf16.mxu1 %v1644_v0  ;;  %1332 = vmatprep.subr.bf16.mxu0 %v1644_v0 }
  0x76   :  { %402 = vmatmul.mubr.bf16.vlgmr.msra.gmra.mxu1 %v141_v30  ;;  %1305 = vmatmul.mubr.bf16.vlgmr.msra.gmra.mxu0 %v152_v31 }
  0x77   :  { %1310 = vmatprep.mubr.msk.bf16.mxu1 %vm1646_vm0, %v1644_v0  ;;  %1348 = vmatprep.mubr.msk.bf16.mxu0 %vm1646_vm0, %v1644_v0 }
  0x78   :  { %1333 = vmatpush3.bf16.msra.mxu0 %v1399_v22  ;;  %v1440_v22 = vld [vmem:[#allocation14 + $0x18] sm:$0xff]  }
  0x79   :  { %1334 = vmatprep.subr.bf16.mxu0 %v1644_v0 }
  0x7c   :  { %1335 = vmatpush3.bf16.msra.mxu0 %v1400_v23 }
  0x7d   :  { %1336 = vmatprep.subr.bf16.mxu0 %v1644_v0 }
  0x80   :  { %1337 = vmatpush3.bf16.msra.mxu0 %v1401_v24 }
  0x81   :  { %1338 = vmatprep.subr.bf16.mxu0 %v1644_v0 }
  0x84   :  { %1339 = vmatpush3.bf16.msra.mxu0 %v1402_v25 }
  0x85   :  { %1340 = vmatprep.subr.bf16.mxu0 %v1644_v0 }
  0x88   :  { %1341 = vmatpush3.bf16.msra.mxu0 %v1403_v26 }
  0x89   :  { %1342 = vmatprep.subr.bf16.mxu0 %v1644_v0 }
 0x136   :  { %v403_v37 = vpop.f32.mrf.mxu1  ;;  %v255_v40 = vpop.f32.mrf.mxu0 }
 0x137   :  { %v404_v38 = vadd.f32 %v403_v37, %v282_v36  ;;  %v256_v45 = vadd.f32 %v1167_v39, %v255_v40  ;;  %v1405_v40 = vld [vmem:[#allocation11 + $0x8] sm:$0xff]  }
 0x138   :  { %v405_v42 = vpop.f32.mrf.mxu1  ;;  %v1306_v44 = vpop.f32.mrf.mxu0 }
 0x139   :  { %v414_v43 = vpack.c.bf16 %v404_v38, %v404_v38  ;;  %v412_v53 = vpack.c.bf16 %v256_v45, %v256_v45  ;;  %v406_v57 = vadd.f32 %v405_v42, %v286_v47  ;;  %v1406_v42 = vld [vmem:[#allocation11] sm:$0xff]  }
 0x13a   :  { %v407_v46 = vpop.f32.mrf.mxu1  ;;  %v258_v48 = vpop.f32.mrf.mxu0 }
 0x13b   :  { %1309 = vmatpush3.bf16.xpose.msra.mxu1 %v414_v43  ;;  %v408_v50 = vadd.f32 %v407_v46, %v282_v36  ;;  %v259_v58 = vadd.f32 %v1167_v39, %v258_v48  ;;  %v523_v59 = vpack.c.bf16 %v406_v57, %v406_v57  ;;  %v1404_v39 = vld [vmem:[#allocation11 + $0x10] sm:$0xff]  }
 0x13c   :  { %v409_v49 = vpop.f32.mrf.mxu1  ;;  %1314 = vmatprep.subr.bf16.mxu1 %v1644_v0  ;;  %v1307_v52 = vpop.f32.mrf.mxu0  ;;  %1343 = vmatpush3.bf16.msra.mxu0 %v1404_v39 }
 0x13d   :  { %v410_v51 = vadd.f32 %v409_v49, %v286_v47  ;;  %v415_v55 = vpack.c.bf16 %v408_v50, %v408_v50  ;;  %v413_v60 = vpack.c.bf16 %v259_v58, %v259_v58  ;;  %v530_v61 = vsel %vm528_vm1, %v523_v59, 0  ;;  %1344 = vmatprep.subr.bf16.mxu0 %v1644_v0 }
 0x13f   :  { %v524_v54 = vpack.c.bf16 %v410_v51, %v410_v51  ;;  %v1194_v51 = vld [vmem:[%s1846_s7 + $0x1] ss:$0 sm:$0xff] }
 0x140   :  { %1345 = vmatpush3.bf16.msra.mxu0 %v1405_v40 }
 0x141   :  { %v1769_v56 = vsel %vm528_vm1, %v524_v54, 0  ;;  %1346 = vmatprep.subr.bf16.mxu0 %v1644_v0 }
 0x142   :  { %1311 = vmatmul.mubr.bf16.vlgmr.msra.gmra.mxu1 %v412_v53 }
 0x143   :  { %1315 = vmatpush3.bf16.xpose.msra.mxu1 %v415_v55  ;;  %1316 = vmatprep.mubr.msk.bf16.mxu1 %vm1646_vm0, %v1644_v0 }
 0x144   :  { %1320 = vmatprep.subr.bf16.mxu1 %v1644_v0  ;;  %1347 = vmatpush3.bf16.msra.mxu0 %v1406_v42 }
 0x14a   :  { %1317 = vmatmul.mubr.bf16.vlgmr.msra.gmra.mxu1 %v413_v60 }
 0x14b   :  { %1321 = vmatpush3.bf16.msra.mxu1 %v530_v61  ;;  %1322 = vmatprep.mubr.msk.bf16.mxu1 %vm1646_vm0, %v1644_v0  ;;  %v1407_v61 = vld [vmem:[#allocation12 + $0x70] ss:$8 sps:$4 sm:$0xff]  }
 0x14c   :  { %1326 = vmatprep.subr.bf16.mxu1 %v1644_v0 }
 0x202   :  { %v450_v62 = vpop.f32.mrf.mxu1 }
 0x203   :  { %v496_v63 = vmul.f32 0.088388346, %v450_v62  ;;  %v1412_v62 = vld [vmem:[#allocation12 + $0x64] ss:$8 sps:$4 sm:$0xff]  }
 0x204   :  { %v1312_v2 = vpop.f32.mrf.mxu1 }
 0x205   :  { %v499_v3 = vsel %vm498_vm2, %v496_v63, -inf  ;;  %v1413_v2 = vld [vmem:[#allocation12 + $0x50] ss:$8 sps:$4 sm:$0xff]  }
 0x206   :  { %500 = vmax.xlane.f32.xlu0 %v499_v3  ;;  %v453_v4 = vpop.f32.mrf.mxu1  ;;  %v1416_v3 = vld [vmem:[#allocation12 + $0x40] ss:$8 sps:$4 sm:$0xff]  }
 0x207   :  { %v1418_v4 = vld [vmem:[#allocation12 + $0x44] ss:$8 sps:$4 sm:$0xff]  }
 0x208   :  { %v1313_v5 = vpop.f32.mrf.mxu1 }
 0x209   :  { %v1421_v5 = vld [vmem:[#allocation12 + $0x34] ss:$8 sps:$4 sm:$0xff]  }
 0x20a   :  { %v490_v6 = vpop.f32.mrf.mxu1 }
 0x20b   :  { %v497_v7 = vmul.f32 0.088388346, %v490_v6  ;;  %v1419_v6 = vld [vmem:[#allocation12 + $0x30] ss:$8 sps:$4 sm:$0xff]  }
 0x20c   :  { %v1318_v8 = vpop.f32.mrf.mxu1 }
 0x20d   :  { %v502_v9 = vsel %vm498_vm2, %v497_v7, -inf  ;;  %v1422_v8 = vld [vmem:[#allocation12 + $0x20] ss:$8 sps:$4 sm:$0xff]  }
 0x20e   :  { %503 = vmax.xlane.f32.xlu0 %v502_v9  ;;  %v493_v10 = vpop.f32.mrf.mxu1  ;;  %v1427_v9 = vld [vmem:[#allocation12 + $0x14] ss:$8 sps:$4 sm:$0xff]  }
 0x20f   :  { %v1425_v10 = vld [vmem:[#allocation12 + $0x10] ss:$8 sps:$4 sm:$0xff]  }
 0x210   :  { %v1319_v11 = vpop.f32.mrf.mxu1 }
 0x211   :  { %v1430_v11 = vld [vmem:[#allocation12 + $0x4] ss:$8 sps:$4 sm:$0xff]  }
 0x28f   :  { %v501_v12 = vpop.xlane.xlu0 %500 }
 0x290   :  { %v505_v13 = vsub.f32 %v496_v63, %v501_v12  ;;  %v1410_v63 = vld [vmem:[#allocation12 + $0x60] ss:$8 sps:$4 sm:$0xff]  }
 0x291   :  { %v1428_v12 = vld [vmem:[#allocation12] ss:$8 sps:$4 sm:$0xff]  }
 0x292   :  { %v507_v14 = vmul.f32 1.442695, %v505_v13  ;;  %v1431_v13 = vld [vmem:[#allocation14 + $0x78] sm:$0xff]  }
 0x293   :  { %1266 = vmatprep.subr.bf16.mxu0 %v1431_v13 }
 0x294   :  { %1447 = vpow2.f32 %v507_v14  ;;  %v1432_v14 = vld [vmem:[#allocation14 + $0x38] sm:$0xff]  }
 0x297   :  { %v504_v15 = vpop.xlane.xlu0 %503 }
 0x298   :  { %v506_v16 = vsub.f32 %v497_v7, %v504_v15  ;;  %v1424_v7 = vld [vmem:[#allocation12 + $0x24] ss:$8 sps:$4 sm:$0xff]   ;;  %v1433_v15 = vld [vmem:[#allocation14 + $0x70] sm:$0xff]  }
 0x29a   :  { %v509_v17 = vmul.f32 1.442695, %v506_v16  ;;  %v1434_v16 = vld [vmem:[#allocation14 + $0x30] sm:$0xff]  }
 0x29c   :  { %1449 = vpow2.f32 %v509_v17  ;;  %v1435_v17 = vld [vmem:[#allocation14 + $0x68] sm:$0xff]  }
 0x2a1   :  { %v1448_v18 = vpop.eup %1447 }
 0x2a2   :  { %v511_v19 = vsel %vm498_vm2, %v1448_v18, 0.0 }
 0x2a3   :  { %512 = vadd.xlane.f32.xlu1 %v511_v19  ;;  %v1437_v19 = vld [vmem:[#allocation14 + $0x60] sm:$0xff]  }
 0x2a9   :  { %v1450_v20 = vpop.eup %1449 }
 0x2aa   :  { %v514_v21 = vsel %vm498_vm2, %v1450_v20, 0.0 }
 0x2ab   :  { %515 = vadd.xlane.f32.xlu1 %v514_v21  ;;  %v1439_v21 = vld [vmem:[#allocation14 + $0x58] sm:$0xff]  }
 0x32c   :  { %v513_v27 = vpop.xlane.xlu1 %512 }
 0x32d   :  { %1451 = vrcp.f32 %v513_v27 }
 0x334   :  { %v516_v30 = vpop.xlane.xlu1 %515 }
 0x335   :  { %1453 = vrcp.f32 %v516_v30 }
 0x33a   :  { %v1452_v31 = vpop.eup %1451 }
 0x33b   :  { %v519_v32 = vmul.f32 %v1452_v31, %v1448_v18  ;;  %v1436_v18 = vld [vmem:[#allocation14 + $0x28] sm:$0xff]  }
 0x33d   :  { %v521_v35 = vpack.c.bf16 %v519_v32, %v519_v32 }
 0x33f   :  { %1323 = vmatmul.mubr.msk.bf16.vlgmr.msra.gmra.mxu1 %vm498_vm2, %v521_v35 }
 0x340   :  { %1327 = vmatpush3.bf16.msra.mxu1 %v1769_v56  ;;  %1328 = vmatprep.mubr.msk.bf16.mxu1 %vm1646_vm0, %v1644_v0 }
 0x342   :  { %v1454_v36 = vpop.eup %1453 }
 0x343   :  { %v520_v37 = vmul.f32 %v1454_v36, %v1450_v20  ;;  %v1438_v20 = vld [vmem:[#allocation14 + $0x20] sm:$0xff]  }
 0x345   :  { %v522_v38 = vpack.c.bf16 %v520_v37, %v520_v37 }
 0x347   :  { %1329 = vmatmul.mubr.msk.bf16.vlgmr.msra.gmra.mxu1 %vm498_vm2, %v522_v38 }
 0x348   :  { %909 = vmatprep.mubr.bf16.mxu1 %v1645_v1 }
 0x3ff   :  { %v566_v43 = vpop.f32.mrf.mxu1 }
 0x401   :  { %v1324_v44 = vpop.f32.mrf.mxu1 }
 0x403   :  { %v569_v45 = vpop.f32.mrf.mxu1 }
 0x404   :  { %v1203_v45 = vld [vmem:[%s1846_s7 + $0x2] ss:$0 sm:$0xff] }
 0x405   :  { %v1325_v46 = vpop.f32.mrf.mxu1 }
 0x407   :  { %v612_v47 = vpop.f32.mrf.mxu1 }
 0x408   :  { %v618_v48 = vpack.c.bf16 %v612_v47, %v566_v43 }
 0x409   :  { %v1330_v49 = vpop.f32.mrf.mxu1 }
 0x40a   :  { %1349 = vmatmul.mubr.bf16.vlgmr.msra.gmra.mxu0 %v618_v48 }
 0x40b   :  { %v615_v50 = vpop.f32.mrf.mxu1  ;;  %1267 = vmatpush3.bf16.msra.mxu0 %v1432_v14 }
 0x40c   :  { %1268 = vmatprep.subr.bf16.mxu0 %v1433_v15  ;;  %v1204_v50 = vld [vmem:[%s1846_s7 + $0x3] ss:$0 sm:$0xff] }
 0x40d   :  { %v1331_v1 = vpop.f32.mrf.mxu1 }
 0x40f   :  { %1269 = vmatpush3.bf16.msra.mxu0 %v1434_v16 }
 0x410   :  { %1270 = vmatprep.subr.bf16.mxu0 %v1435_v17 }
 0x413   :  { %1271 = vmatpush3.bf16.msra.mxu0 %v1436_v18 }
 0x414   :  { %1272 = vmatprep.subr.bf16.mxu0 %v1437_v19 }
 0x417   :  { %1273 = vmatpush3.bf16.msra.mxu0 %v1438_v20 }
 0x418   :  { %1274 = vmatprep.subr.bf16.mxu0 %v1439_v21 }
 0x41b   :  { %1275 = vmatpush3.bf16.msra.mxu0 %v1440_v22 }
 0x4ca   :  { %v721_v52 = vpop.f32.mrf.mxu0 }
 0x4cb   :  { %v722_v53 = vadd.f32 %v1194_v51, %v721_v52 }
 0x4cc   :  { %v1350_v54 = vpop.f32.mrf.mxu0 }
 0x4cd   :  { %v1798_v0 = vadd.f32 %v722_v53, %v1741_v28  ;;  %v1409_v28 = vld [vmem:[#allocation12 + $0x74] ss:$8 sps:$4 sm:$0xff]  }
 0x4ce   :  { %v724_v55 = vpop.f32.mrf.mxu0  ;;  %877 = vmatprep.subr.bf16.mxu1 %v1409_v28  ;;  %v1441_v54 = vld [vmem:[#allocation14 + $0x50] sm:$0xff]  }
 0x4cf   :  { %v725_v56 = vadd.f32 %v1194_v51, %v724_v55  ;;  %730 = vadd.xlane.f32.xlu0 %v1798_v0  ;;  %v737_v59 = vmul.f32 %v1798_v0, %v1798_v0  ;;  %878 = vmatpush1.bf16.msra.mxu1 %v1407_v61  ;;  %v1443_v55 = vld [vmem:[#allocation14 + $0x48] sm:$0xff]  }
 0x4d0   :  { %v1351_v57 = vpop.f32.mrf.mxu0  ;;  %879 = vmatprep.subr.bf16.mxu1 %v1412_v62  ;;  %1276 = vmatprep.subr.bf16.mxu0 %v1441_v54 }
 0x4d1   :  { %v1802_v58 = vadd.f32 %v725_v56, %v1743_v29  ;;  %v1415_v29 = vld [vmem:[#allocation12 + $0x54] ss:$8 sps:$4 sm:$0xff]   ;;  %v1444_v56 = vld [vmem:[#allocation14 + $0x8] sm:$0xff]   ;;  %v1445_v57 = vld [vmem:[#allocation14 + $0x40] sm:$0xff]  }
 0x4d3   :  { %739 = vadd.xlane.f32.xlu0 %v737_v59  ;;  %732 = vadd.xlane.f32.xlu1 %v1802_v58  ;;  %v738_v60 = vmul.f32 %v1802_v58, %v1802_v58  ;;  %v1166_v59 = vld [vmem:[%s1847_s8 + $0x1] ss:$2 sm:$0x3] }
 0x4d4   :  { %880 = vmatpush1.bf16.msra.mxu1 %v1410_v63  ;;  %v794_v28 = vrot.slane %v1166_v59, %v285_v41  ;;  %v790_v61 = vrot.slane %v1166_v59, %v281_v34 }
 0x4d5   :  { %881 = vmatprep.subr.bf16.mxu1 %v1415_v29 }
 0x4d7   :  { %741 = vadd.xlane.f32.xlu1 %v738_v60 }
 0x4d8   :  { %882 = vmatpush1.bf16.msra.mxu1 %v1413_v2 }
 0x4d9   :  { %883 = vmatprep.subr.bf16.mxu1 %v1418_v4 }
 0x4dc   :  { %884 = vmatpush1.bf16.msra.mxu1 %v1416_v3 }
 0x4dd   :  { %885 = vmatprep.subr.bf16.mxu1 %v1421_v5 }
 0x4e0   :  { %886 = vmatpush1.bf16.msra.mxu1 %v1419_v6 }
 0x4e1   :  { %887 = vmatprep.subr.bf16.mxu1 %v1424_v7 }
 0x4e4   :  { %888 = vmatpush1.bf16.msra.mxu1 %v1422_v8 }
 0x4e5   :  { %889 = vmatprep.subr.bf16.mxu1 %v1427_v9 }
 0x4e8   :  { %890 = vmatpush1.bf16.msra.mxu1 %v1425_v10 }
 0x4e9   :  { %891 = vmatprep.subr.bf16.mxu1 %v1430_v11 }
 0x4ec   :  { %892 = vmatpush1.bf16.msra.mxu1 %v1428_v12 }
 0x558   :  { %v731_v23 = vpop.xlane.xlu0 %730 }
 0x559   :  { %v735_v24 = vmul.f32 0.0078125, %v731_v23 }
 0x55b   :  { %v745_v27 = vmul.f32 %v735_v24, %v735_v24  ;;  %v749_v42 = vsub.f32 %v1798_v0, %v735_v24  ;;  %v1442_v0 = vld [vmem:[#allocation14 + $0x10] sm:$0xff]  }
 0x55c   :  { %v740_v25 = vpop.xlane.xlu0 %739  ;;  %v733_v26 = vpop.xlane.xlu1 %732  ;;  %1277 = vmatpush3.bf16.msra.mxu0 %v1442_v0 }
 0x55d   :  { %v743_v30 = vmul.f32 0.0078125, %v740_v25  ;;  %v736_v31 = vmul.f32 0.0078125, %v733_v26  ;;  %1278 = vmatprep.subr.bf16.mxu0 %v1443_v55 }
 0x55f   :  { %v747_v32 = vsub.f32 %v743_v30, %v745_v27  ;;  %v746_v37 = vmul.f32 %v736_v31, %v736_v31  ;;  %v750_v46 = vsub.f32 %v1802_v58, %v736_v31  ;;  %v1446_v58 = vld [vmem:[#allocation14] sm:$0xff]  }
 0x560   :  { %v742_v35 = vpop.xlane.xlu1 %741  ;;  %1279 = vmatpush3.bf16.msra.mxu0 %v1444_v56 }
 0x561   :  { %v751_v36 = vadd.f32 1e-05, %v747_v32  ;;  %v744_v38 = vmul.f32 0.0078125, %v742_v35  ;;  %1280 = vmatprep.subr.bf16.mxu0 %v1445_v57 }
 0x563   :  { %1455 = vrsqrt.f32 %v751_v36  ;;  %v748_v39 = vsub.f32 %v744_v38, %v746_v37 }
 0x564   :  { %1281 = vmatpush3.bf16.msra.mxu0 %v1446_v58 }
 0x565   :  { %v752_v40 = vadd.f32 1e-05, %v748_v39 }
 0x567   :  { %1457 = vrsqrt.f32 %v752_v40 }
 0x570   :  { %v1456_v43 = vpop.eup %1455 }
 0x571   :  { %v755_v44 = vmul.f32 %v1456_v43, %v749_v42  ;;  %v1238_v43 = vld [vmem:[%s1846_s7 + $0x5] ss:$0 sm:$0xff] }
 0x573   :  { %v761_v49 = vmul.f32 %v1203_v45, %v755_v44 }
 0x574   :  { %v1458_v47 = vpop.eup %1457 }
 0x575   :  { %v756_v48 = vmul.f32 %v1458_v47, %v750_v46  ;;  %v767_v51 = vadd.f32 %v1204_v50, %v761_v49 }
 0x577   :  { %v762_v1 = vmul.f32 %v1203_v45, %v756_v48  ;;  %v1239_v45 = vld [vmem:[%s1846_s7 + $0x6] ss:$0 sm:$0xff] }
 0x579   :  { %v768_v52 = vadd.f32 %v1204_v50, %v762_v1 }
 0x57b   :  { %v769_v53 = vpack.c.bf16 %v768_v52, %v767_v51 }
 0x57d   :  { %910 = vmatmul.mubr.bf16.vlgmr.msra.gmra.mxu1 %v769_v53 }
 0x63d   :  { %v911_v60 = vpop.f32.mrf.mxu1 }
 0x63e   :  { %v912_v3 = vadd.f32 %v911_v60, %v790_v61 }
 0x63f   :  { %v913_v62 = vpop.f32.mrf.mxu1 }
 0x640   :  { %v914_v29 = vadd.f32 %v913_v62, %v794_v28  ;;  %v920_v9 = vmax.f32 %v912_v3, 0.0 }
 0x641   :  { %v915_v63 = vpop.f32.mrf.mxu1 }
 0x642   :  { %v916_v2 = vadd.f32 %v915_v63, %v790_v61  ;;  %v921_v7 = vmax.f32 %v914_v29, 0.0 }
 0x643   :  { %v917_v4 = vpop.f32.mrf.mxu1 }
 0x644   :  { %v918_v5 = vadd.f32 %v917_v4, %v794_v28  ;;  %v922_v6 = vmax.f32 %v916_v2, 0.0 }
 0x646   :  { %v923_v8 = vmax.f32 %v918_v5, 0.0  ;;  %v924_v11 = vpack.c.bf16 %v922_v6, %v920_v9 }
 0x648   :  { %v925_v10 = vpack.c.bf16 %v923_v8, %v921_v7 }
 0x64a   :  { %1090 = vmatprep.mubr.bf16.mxu0 %v925_v10 }
 0x64b   :  { %1091 = vmatmul.mubr.bf16.vlgmr.msra.gmra.mxu0 %v924_v11 }
 0x70b   :  { %v1282_v12 = vpop.f32.mrf.mxu0 }
 0x70d   :  { %v1283_v34 = vpop.f32.mrf.mxu0 }
 0x70e   :  { %v1284_v41 = vadd.f32 %v1283_v34, %v1282_v12 }
 0x70f   :  { %v1285_v13 = vpop.f32.mrf.mxu0 }
 0x710   :  { %v1093_v14 = vadd.f32 %v1284_v41, %v1221_v33 }
 0x711   :  { %v1286_v15 = vpop.f32.mrf.mxu0 }
 0x712   :  { %v1287_v16 = vadd.f32 %v1286_v15, %v1285_v13  ;;  %v1099_v17 = vadd.f32 %v1093_v14, %v767_v51 }
 0x714   :  { %v1096_v18 = vadd.f32 %v1287_v16, %v1221_v33  ;;  %1101 = vadd.xlane.f32.xlu0 %v1099_v17  ;;  %v1107_v20 = vmul.f32 %v1099_v17, %v1099_v17 }
 0x716   :  { %v1100_v19 = vadd.f32 %v1096_v18, %v768_v52 }
 0x718   :  { %1103 = vadd.xlane.f32.xlu1 %v1100_v19  ;;  %1109 = vadd.xlane.f32.xlu0 %v1107_v20  ;;  %v1108_v21 = vmul.f32 %v1100_v19, %v1100_v19 }
 0x71c   :  { %1111 = vadd.xlane.f32.xlu1 %v1108_v21 }
 0x79d   :  { %v1102_v22 = vpop.xlane.xlu0 %1101 }
 0x79e   :  { %v1105_v23 = vmul.f32 0.0078125, %v1102_v22 }
 0x7a0   :  { %v1115_v26 = vmul.f32 %v1105_v23, %v1105_v23  ;;  %v1119_v40 = vsub.f32 %v1099_v17, %v1105_v23 }
 0x7a1   :  { %v1104_v24 = vpop.xlane.xlu1 %1103  ;;  %v1110_v25 = vpop.xlane.xlu0 %1109 }
 0x7a2   :  { %v1106_v27 = vmul.f32 0.0078125, %v1104_v24  ;;  %v1113_v30 = vmul.f32 0.0078125, %v1110_v25 }
 0x7a4   :  { %v1117_v31 = vsub.f32 %v1113_v30, %v1115_v26  ;;  %v1116_v35 = vmul.f32 %v1106_v27, %v1106_v27  ;;  %v1120_v46 = vsub.f32 %v1100_v19, %v1106_v27 }
 0x7a5   :  { %v1112_v32 = vpop.xlane.xlu1 %1111 }
 0x7a6   :  { %v1121_v36 = vadd.f32 1e-05, %v1117_v31  ;;  %v1114_v37 = vmul.f32 0.0078125, %v1112_v32 }
 0x7a8   :  { %1459 = vrsqrt.f32 %v1121_v36  ;;  %v1118_v38 = vsub.f32 %v1114_v37, %v1116_v35 }
 0x7aa   :  { %v1122_v39 = vadd.f32 1e-05, %v1118_v38 }
 0x7ac   :  { %1461 = vrsqrt.f32 %v1122_v39 }
 0x7b5   :  { %v1460_v42 = vpop.eup %1459 }
 0x7b6   :  { %v1125_v44 = vmul.f32 %v1460_v42, %v1119_v40 }
 0x7b8   :  { %v1131_v47 = vmul.f32 %v1238_v43, %v1125_v44 }
 0x7b9   :  { %v1462_v48 = vpop.eup %1461 }
 0x7ba   :  { %v1126_v49 = vmul.f32 %v1462_v48, %v1120_v46  ;;  %v1137_v50 = vadd.f32 %v1239_v45, %v1131_v47 }
 0x7bc   :  { %v1132_v1 = vmul.f32 %v1238_v43, %v1126_v49  ;;  %1144 = vst [vmem:[#allocation15] sm:$0xff] %v1137_v50 }
 0x7be   :  { %v1138_v51 = vadd.f32 %v1239_v45, %v1132_v1 }
 0x7c0   :  { %1145 = vst [vmem:[#allocation15 + $0x8] sm:$0xff] %v1138_v51 }
 0x7c1   :  { %1614 = shalt.err (!%p1611_p11)
}
 0x7c2   :  { %1157 = dma.vmem_to_hbm [thread:$0]  %s1152_s0, 256, %s1848_s9, [#allocation5], %s1635_s14, %s1635_s14, %s1636_s15  }
 0x7c3   :  { %1631 = dma.done.wait [#allocation5], 256  }
 0x7c4   :  { %1632 = vsyncadd [#allocation5], 4294967040 }
 0x7c5   :  { %1161 = vsyncpa [#allocation4], 1 }
 0x7c6   :  { %1162 = vsyncpa [#allocation7], 1 }
 0x7c7   :  { %1163 = vsyncpa [#allocation10], 1 }
 0x7c8   :  { %1164 = vsyncpa [#allocation13], 1 }
 0x7c9   :  { %1165 = vsyncpa [#allocation5], 1 }

</bundles_post_ra>
